<compile_context>
chip_gen: v6e
topology: v6e:2x2x1
jax: 0.10.0
libtpu: 0.0.40
codegen_flags: <defaults>
</compile_context>

<pallas_src>
import jax
import jax.numpy as jnp
from jax.experimental import pallas as pl
from jax.experimental.pallas import tpu as pltpu

# ----------------------------- config (MicroLMConfig subset) -----------------------------
DIM = 32
MULTIPLE_OF = 16
N_ROUTED_EXPERTS = 4
NUM_EXPERTS_PER_TOK = 2
N_SHARED_EXPERTS = 1          # not None -> shared expert branch is active
NORM_TOPK_PROB = True
BATCH = 2
SEQ = 8


def _hidden_dim(dim, multiple_of):
    hd = 4 * dim
    hd = int(2 * hd / 3)
    return multiple_of * ((hd + multiple_of - 1) // multiple_of)


HIDDEN = _hidden_dim(DIM, MULTIPLE_OF)                        # 96 for dim=32
E_TOTAL = N_ROUTED_EXPERTS + (1 if N_SHARED_EXPERTS is not None else 0)
EH = E_TOTAL * HIDDEN                                         # 480
EH_PAD = ((EH + 127) // 128) * 128                            # 512 (lane / K aligned)


# ----------------------------- Pallas kernel -----------------------------
def moe_fused_kernel(x_ref, w1_ref, w3_ref, w2_ref, scale_ref, y_ref):
    """All experts (routed + shared) in one shot.

      h1    = x @ W1cat                      (T, EH_PAD)
      h3    = x @ W3cat                      (T, EH_PAD)
      inter = silu(h1) * h3 * routing scale  (scale = per-token per-expert weight)
      y     = inter @ W2cat                  (T, D)  <- weighted sum over experts
    """
    x = x_ref[...]
    h1 = jnp.dot(x, w1_ref[...], preferred_element_type=jnp.float32)
    h3 = jnp.dot(x, w3_ref[...], preferred_element_type=jnp.float32)
    inter = (h1 * jax.nn.sigmoid(h1)) * h3 * scale_ref[...]   # SiLU gate (exp on EUP)
    y_ref[...] = jnp.dot(inter, w2_ref[...], preferred_element_type=jnp.float32)


def moe_ffn_fused(x_flat, w1c, w3c, w2c, scale, *, token_tile=None):
    T, D = x_flat.shape
    ehp = w1c.shape[1]
    tt = T if token_tile is None else token_tile   # token tile: >1 grid step only at large T
    assert T % tt == 0
    return pl.pallas_call(
        moe_fused_kernel,
        out_shape=jax.ShapeDtypeStruct((T, D), jnp.float32),
        grid=(T // tt,),
        in_specs=[
            pl.BlockSpec((tt, D), lambda i: (i, 0)),      # x tokens
            pl.BlockSpec((D, ehp), lambda i: (0, 0)),     # W1cat (resident)
            pl.BlockSpec((D, ehp), lambda i: (0, 0)),     # W3cat (resident)
            pl.BlockSpec((ehp, D), lambda i: (0, 0)),     # W2cat (resident)
            pl.BlockSpec((tt, ehp), lambda i: (i, 0)),    # lane-dense routing scale
        ],
        out_specs=pl.BlockSpec((tt, D), lambda i: (i, 0)),
        compiler_params=pltpu.CompilerParams(
            dimension_semantics=("parallel",)),            # token tiles are independent
    )(x_flat, w1c, w3c, w2c, scale)


# ----------------------------- one-time weight repack (HBM-side) -----------------------------
def pack_params(params):
    """Stack experts, pre-transpose to matmul layout, pad K (=E*H) to a multiple of 128."""
    w1, w3, w2 = params["w1"], params["w3"], params["w2"]
    E, H, D = w1.shape
    w1c = jnp.transpose(w1, (2, 0, 1)).reshape(D, E * H)   # column block e = w1[e].T
    w3c = jnp.transpose(w3, (2, 0, 1)).reshape(D, E * H)
    w2c = jnp.transpose(w2, (0, 2, 1)).reshape(E * H, D)   # row block e = w2[e].T
    pad = EH_PAD - E * H
    w1c = jnp.pad(w1c, ((0, 0), (0, pad)))
    w3c = jnp.pad(w3c, ((0, 0), (0, pad)))
    w2c = jnp.pad(w2c, ((0, pad), (0, 0)))
    # NOTE: at realistic DIM, cast w1c/w3c/w2c to bf16 here (f32 accumulation is kept via
    # preferred_element_type) for v6e/v7x MXU throughput and halved HBM/VMEM traffic.
    return dict(w1c=w1c, w3c=w3c, w2c=w2c, gate_w=params["gate_w"])


# ----------------------------- forward -----------------------------
@jax.jit
def moe_feed_forward(x, packed):
    B, S, D = x.shape
    x_flat = x.reshape(-1, D).astype(jnp.float32)
    T = x_flat.shape[0]

    # --- MoEGate in plain XLA (tiny (T, 4) math; top_k runs in XLA anyway) ---
    logits = x_flat @ packed["gate_w"].T
    scores = jax.nn.softmax(logits, axis=-1)
    topk_w, topk_i = jax.lax.top_k(scores, NUM_EXPERTS_PER_TOK)
    if NUM_EXPERTS_PER_TOK > 1 and NORM_TOPK_PROB:
        topk_w = topk_w / (jnp.sum(topk_w, axis=-1, keepdims=True) + 1e-20)
    # aux_loss = 0 in eval mode (training aux-loss branch not taken)

    # dense (token, expert) routing weights via one-hot compare+reduce (no scatter-add)
    expert_ids = jnp.arange(N_ROUTED_EXPERTS, dtype=topk_i.dtype)
    dense_w = jnp.sum(
        jnp.where(topk_i[:, :, None] == expert_ids[None, None, :],
                  topk_w[:, :, None], 0.0),
        axis=1)                                                        # (T, E_routed)
    # shared expert applied to every token with weight 1.0
    wts = jnp.concatenate([dense_w, jnp.ones((T, 1), jnp.float32)], axis=1)  # (T, E_total)

    # fold routing weights into a lane-dense (T, EH_PAD) activation scale
    scale = jnp.repeat(wts, HIDDEN, axis=1)                            # (T, EH)
    scale = jnp.pad(scale, ((0, 0), (0, EH_PAD - EH)))                 # (T, EH_PAD)

    y_flat = moe_ffn_fused(x_flat, packed["w1c"], packed["w3c"], packed["w2c"], scale)
    return y_flat.reshape(B, S, D)


# ----------------------------- deterministic parameter init -----------------------------
def init_params(key):
    k1, k2, k3, k4 = jax.random.split(key, 4)
    scale = 0.05
    return dict(
        w1=scale * jax.random.normal(k1, (E_TOTAL, HIDDEN, DIM), jnp.float32),
        w3=scale * jax.random.normal(k2, (E_TOTAL, HIDDEN, DIM), jnp.float32),
        w2=scale * jax.random.normal(k3, (E_TOTAL, DIM, HIDDEN), jnp.float32),
        gate_w=scale * jax.random.normal(k4, (N_ROUTED_EXPERTS, DIM), jnp.float32),
    )


# ----------------------------- pure-JAX reference (correctness check) -----------------------------
def _ffn(x, w1, w3, w2):
    h1 = x @ w1.T
    h3 = x @ w3.T
    return (h1 * jax.nn.sigmoid(h1) * h3) @ w2.T


def ref_forward(x, params):
    B, S, D = x.shape
    xf = x.reshape(-1, D)
    logits = xf @ params["gate_w"].T
    scores = jax.nn.softmax(logits, axis=-1)
    topk_w, topk_i = jax.lax.top_k(scores, NUM_EXPERTS_PER_TOK)
    if NUM_EXPERTS_PER_TOK > 1 and NORM_TOPK_PROB:
        topk_w = topk_w / (jnp.sum(topk_w, axis=-1, keepdims=True) + 1e-20)
    y = jnp.zeros_like(xf)
    for e in range(N_ROUTED_EXPERTS):
        w_e = jnp.sum(jnp.where(topk_i == e, topk_w, 0.0), axis=-1, keepdims=True)
        y = y + w_e * _ffn(xf, params["w1"][e], params["w3"][e], params["w2"][e])
    # shared expert
    y = y + _ffn(xf, params["w1"][-1], params["w3"][-1], params["w2"][-1])
    return y.reshape(B, S, D)


# ----------------------------- main -----------------------------
if __name__ == "__main__":
    key = jax.random.PRNGKey(0)
    kx, kp = jax.random.split(key)
    x = jax.random.normal(kx, (BATCH, SEQ, DIM), jnp.float32)
    params = init_params(kp)
    packed = pack_params(params)          # one-time repack, outside the jitted forward

    y = moe_feed_forward(x, packed)
    y = jax.block_until_ready(y)

    y_ref = ref_forward(x, params)
    assert y.shape == (BATCH, SEQ, DIM)
    assert jnp.allclose(y, y_ref, rtol=1e-4, atol=1e-4), "mismatch vs reference"

    print("KERNEL_OK")
</pallas_src>

<mosaic_0001>
module attributes {stable_mosaic.version = 11 : i64} {
  func.func @moe_fused_kernel(%arg0: i32, %arg1: memref<16x32xf32, #tpu.memory_space<vmem>>, %arg2: memref<32x512xf32, #tpu.memory_space<vmem>>, %arg3: memref<32x512xf32, #tpu.memory_space<vmem>>, %arg4: memref<512x32xf32, #tpu.memory_space<vmem>>, %arg5: memref<16x512xf32, #tpu.memory_space<vmem>>, %arg6: memref<16x32xf32, #tpu.memory_space<vmem>>) attributes {dimension_semantics = [#tpu.dimension_semantics<parallel>], iteration_bounds = array<i64: 1>, scalar_prefetch = 0 : i64, scratch_operands = 0 : i64, tpu.core_type = #tpu.core_type<tc>, window_params = [{transform_indices = @transform_0, window_bounds = array<i64: 16, 32>}, {pipeline_mode = #tpu.pipeline_mode<synchronous>, transform_indices = @transform_1, window_bounds = array<i64: 32, 512>}, {pipeline_mode = #tpu.pipeline_mode<synchronous>, transform_indices = @transform_2, window_bounds = array<i64: 32, 512>}, {pipeline_mode = #tpu.pipeline_mode<synchronous>, transform_indices = @transform_3, window_bounds = array<i64: 512, 32>}, {transform_indices = @transform_4, window_bounds = array<i64: 16, 512>}, {transform_indices = @transform_5, window_bounds = array<i64: 16, 32>}]} {
    %c0 = arith.constant 0 : index
    %c0_0 = arith.constant 0 : index
    %0 = vector.load %arg1[%c0, %c0_0] : memref<16x32xf32, #tpu.memory_space<vmem>>, vector<16x32xf32>
    %c0_1 = arith.constant 0 : index
    %c0_2 = arith.constant 0 : index
    %1 = vector.load %arg2[%c0_1, %c0_2] : memref<32x512xf32, #tpu.memory_space<vmem>>, vector<32x512xf32>
    %cst = arith.constant dense<0.000000e+00> : vector<16x512xf32>
    %2 = tpu.matmul %0, %1, %cst {dimension_numbers = #tpu.dot_dimension_numbers<[1], [0], [0], [1], [0, 0, 1, 1], [], []>} : vector<16x32xf32>, vector<32x512xf32>, vector<16x512xf32> -> vector<16x512xf32>
    %c0_3 = arith.constant 0 : index
    %c0_4 = arith.constant 0 : index
    %3 = vector.load %arg3[%c0_3, %c0_4] : memref<32x512xf32, #tpu.memory_space<vmem>>, vector<32x512xf32>
    %cst_5 = arith.constant dense<0.000000e+00> : vector<16x512xf32>
    %4 = tpu.matmul %0, %3, %cst_5 {dimension_numbers = #tpu.dot_dimension_numbers<[1], [0], [0], [1], [0, 0, 1, 1], [], []>} : vector<16x32xf32>, vector<32x512xf32>, vector<16x512xf32> -> vector<16x512xf32>
    %5 = arith.negf %2 : vector<16x512xf32>
    %6 = math.exp %5 : vector<16x512xf32>
    %cst_6 = arith.constant 1.000000e+00 : f32
    %7 = vector.broadcast %cst_6 : f32 to vector<16x512xf32>
    %8 = arith.addf %7, %6 : vector<16x512xf32>
    %9 = arith.divf %7, %8 : vector<16x512xf32>
    %10 = arith.mulf %2, %9 : vector<16x512xf32>
    %11 = arith.mulf %10, %4 : vector<16x512xf32>
    %c0_7 = arith.constant 0 : index
    %c0_8 = arith.constant 0 : index
    %12 = vector.load %arg5[%c0_7, %c0_8] : memref<16x512xf32, #tpu.memory_space<vmem>>, vector<16x512xf32>
    %13 = arith.mulf %11, %12 : vector<16x512xf32>
    %c0_9 = arith.constant 0 : index
    %c0_10 = arith.constant 0 : index
    %14 = vector.load %arg4[%c0_9, %c0_10] : memref<512x32xf32, #tpu.memory_space<vmem>>, vector<512x32xf32>
    %cst_11 = arith.constant dense<0.000000e+00> : vector<16x32xf32>
    %15 = tpu.matmul %13, %14, %cst_11 {dimension_numbers = #tpu.dot_dimension_numbers<[1], [0], [0], [1], [0, 0, 1, 1], [], []>} : vector<16x512xf32>, vector<512x32xf32>, vector<16x32xf32> -> vector<16x32xf32>
    %c0_12 = arith.constant 0 : index
    %c0_13 = arith.constant 0 : index
    %16 = vector.load %arg6[%c0_12, %c0_13] : memref<16x32xf32, #tpu.memory_space<vmem>>, vector<16x32xf32>
    tpu.vector_store %arg6[%c0_12, %c0_13], %15 {strides = array<i32>} : memref<16x32xf32, #tpu.memory_space<vmem>>, vector<16x32xf32>,
    return
  }
  func.func @transform_0(%arg0: i32) -> (i32, i32) {
    %c0_i32 = arith.constant 0 : i32
    %c0_i32_0 = arith.constant 0 : i32
    return %arg0, %c0_i32 : i32, i32
  }
  func.func @transform_1(%arg0: i32) -> (i32, i32) {
    %c0_i32 = arith.constant 0 : i32
    %c0_i32_0 = arith.constant 0 : i32
    %c0_i32_1 = arith.constant 0 : i32
    return %c0_i32, %c0_i32_0 : i32, i32
  }
  func.func @transform_2(%arg0: i32) -> (i32, i32) {
    %c0_i32 = arith.constant 0 : i32
    %c0_i32_0 = arith.constant 0 : i32
    %c0_i32_1 = arith.constant 0 : i32
    return %c0_i32, %c0_i32_0 : i32, i32
  }
  func.func @transform_3(%arg0: i32) -> (i32, i32) {
    %c0_i32 = arith.constant 0 : i32
    %c0_i32_0 = arith.constant 0 : i32
    %c0_i32_1 = arith.constant 0 : i32
    return %c0_i32, %c0_i32_0 : i32, i32
  }
  func.func @transform_4(%arg0: i32) -> (i32, i32) {
    %c0_i32 = arith.constant 0 : i32
    %c0_i32_0 = arith.constant 0 : i32
    return %arg0, %c0_i32 : i32, i32
  }
  func.func @transform_5(%arg0: i32) -> (i32, i32) {
    %c0_i32 = arith.constant 0 : i32
    %c0_i32_0 = arith.constant 0 : i32
    return %arg0, %c0_i32 : i32, i32
  }
}

</mosaic_0001>

<bundles_post_ra>
// kernel: moe_feed_forward.1
= control target key start
LH: loop header
LB: loop body
LE: loop exit
PB: predicated region body
PF: predicated region fallthrough
CT: control target
= control target key end

     0   :  { %vm39_vm0 = vcmask 261120   ;;  %v832_v17 = vmov 0.0   ;;  %s1197_s0 = inlined_call_operand.vmem [shape: f32[16,32], index: 0, kind: input, shape index: {}]   ;;  %s1198_s1 = inlined_call_operand.vmem [shape: f32[32,512], index: 1, kind: input, shape index: {}]   ;;  %s1199_s2 = inlined_call_operand.vmem [shape: f32[32,512], index: 2, kind: input, shape index: {}]   ;;  %s1200_s3 = inlined_call_operand.vmem [shape: f32[512,32], index: 3, kind: input, shape index: {}]   ;;  %s1201_s4 = inlined_call_operand.vmem [shape: f32[16,512], index: 4, kind: input, shape index: {}]   ;;  %s1202_s5 = inlined_call_operand.hbm [shape: f32[16,32], index: 5, kind: output, shape index: {}]  }
   0x1   :  { %v36_v0 = vld [vmem:[%s1198_s1 + $0x68] sm:$0xff]  ;;  %v38_v1 = vld [vmem:[%s1198_s1 + $0x78] sm:$0xff]  ;;  %v35_v2 = vld [vmem:[%s1198_s1 + $0x60] sm:$0xff]  ;;  %110 = vmatprep.mubr.f32.mxu0 %v832_v17  ;;  %187 = vmatprep.mubr.f32.mxu1 %v832_v17 }
   0x2   :  { %70 = vmatprep.subr.mxu0 %v36_v0  ;;  %147 = vmatprep.subr.mxu1 %v38_v1  ;;  %v37_v3 = vld [vmem:[%s1198_s1 + $0x70] sm:$0xff]  ;;  %v32_v4 = vld [vmem:[%s1198_s1 + $0x48] sm:$0xff]  ;;  %v34_v5 = vld [vmem:[%s1198_s1 + $0x58] sm:$0xff] }
   0x3   :  { %71 = vmatpush1.msra.mxu0 %v35_v2  ;;  %148 = vmatpush1.msra.mxu1 %v37_v3  ;;  %v31_v6 = vld [vmem:[%s1198_s1 + $0x40] sm:$0xff]  ;;  %v33_v7 = vld [vmem:[%s1198_s1 + $0x50] sm:$0xff]  ;;  %v28_v8 = vld [vmem:[%s1198_s1 + $0x28] sm:$0xff] }
   0x4   :  { %72 = vmatprep.subr.mxu0 %v32_v4  ;;  %149 = vmatprep.subr.mxu1 %v34_v5  ;;  %v30_v9 = vld [vmem:[%s1198_s1 + $0x38] sm:$0xff]  ;;  %v27_v10 = vld [vmem:[%s1198_s1 + $0x20] sm:$0xff]  ;;  %v29_v11 = vld [vmem:[%s1198_s1 + $0x30] sm:$0xff] }
   0x5   :  { %73 = vmatpush1.msra.mxu0 %v31_v6  ;;  %150 = vmatpush1.msra.mxu1 %v33_v7  ;;  %v24_v12 = vld [vmem:[%s1198_s1 + $0x8] sm:$0xff]  ;;  %v26_v13 = vld [vmem:[%s1198_s1 + $0x18] sm:$0xff]  ;;  %v23_v14 = vld [vmem:[%s1198_s1] sm:$0xff] }
   0x6   :  { %74 = vmatprep.subr.mxu0 %v28_v8  ;;  %151 = vmatprep.subr.mxu1 %v30_v9  ;;  %v25_v15 = vld [vmem:[%s1198_s1 + $0x10] sm:$0xff]  ;;  %v21_v16 = vld [vmem:[%s1197_s0] sm:$0xff]  ;;  %v213_v18 = vld [vmem:[%s1199_s2 + $0x68] sm:$0xff] }
   0x7   :  { %75 = vmatpush1.msra.mxu0 %v27_v10  ;;  %152 = vmatpush1.msra.mxu1 %v29_v11  ;;  %v215_v19 = vld [vmem:[%s1199_s2 + $0x78] sm:$0xff]  ;;  %v212_v20 = vld [vmem:[%s1199_s2 + $0x60] sm:$0xff]  ;;  %v214_v21 = vld [vmem:[%s1199_s2 + $0x70] sm:$0xff] }
   0x8   :  { %76 = vmatprep.subr.mxu0 %v24_v12  ;;  %153 = vmatprep.subr.mxu1 %v26_v13  ;;  %v22_v22 = vld [vmem:[%s1197_s0 + $0x8] sm:$0xff] }
   0x9   :  { %77 = vmatpush1.msra.mxu0 %v23_v14  ;;  %154 = vmatpush1.msra.mxu1 %v25_v15 }
   0xa   :  { %682 = vmatmul.mubr.msk.f32.vlgmr.msra.gmra.mxu0 %vm39_vm0, %v21_v16  ;;  %684 = vmatmul.mubr.msk.f32.vlgmr.msra.gmra.mxu1 %vm39_vm0, %v21_v16 }
   0xb   :  { %116 = vmatprep.mubr.f32.mxu0 %v832_v17  ;;  %193 = vmatprep.mubr.f32.mxu1 %v832_v17 }
   0xc   :  { %10 = vsyncpa [#allocation3], 0  ;;  %240 = vmatprep.subr.mxu0 %v213_v18  ;;  %317 = vmatprep.subr.mxu1 %v215_v19  ;;  %v209_v23 = vld [vmem:[%s1199_s2 + $0x48] sm:$0xff]  ;;  %v211_v24 = vld [vmem:[%s1199_s2 + $0x58] sm:$0xff] }
   0xd   :  { %241 = vmatpush1.msra.mxu0 %v212_v20  ;;  %318 = vmatpush1.msra.mxu1 %v214_v21  ;;  %v208_v25 = vld [vmem:[%s1199_s2 + $0x40] sm:$0xff]  ;;  %v210_v26 = vld [vmem:[%s1199_s2 + $0x50] sm:$0xff]  ;;  %v205_v27 = vld [vmem:[%s1199_s2 + $0x28] sm:$0xff] }
   0xe   :  { %683 = vmatmul.mubr.msk.f32.gmra.mxu0 %vm39_vm0, %v22_v22  ;;  %685 = vmatmul.mubr.msk.f32.gmra.mxu1 %vm39_vm0, %v22_v22  ;;  %v207_v28 = vld [vmem:[%s1199_s2 + $0x38] sm:$0xff]  ;;  %v204_v29 = vld [vmem:[%s1199_s2 + $0x20] sm:$0xff]  ;;  %v206_v30 = vld [vmem:[%s1199_s2 + $0x30] sm:$0xff] }
   0xf   :  { %242 = vmatprep.subr.mxu0 %v209_v23  ;;  %319 = vmatprep.subr.mxu1 %v211_v24  ;;  %v201_v31 = vld [vmem:[%s1199_s2 + $0x8] sm:$0xff]  ;;  %v203_v32 = vld [vmem:[%s1199_s2 + $0x18] sm:$0xff]  ;;  %v200_v33 = vld [vmem:[%s1199_s2] sm:$0xff] }
  0x10   :  { %243 = vmatpush1.msra.mxu0 %v208_v25  ;;  %320 = vmatpush1.msra.mxu1 %v210_v26  ;;  %v202_v34 = vld [vmem:[%s1199_s2 + $0x10] sm:$0xff]  ;;  %v481_v35 = vld [vmem:[%s1200_s3 + $0xf8] sm:$0xff]  ;;  %v479_v43 = vld [vmem:[%s1200_s3 + $0xe8] sm:$0xff] }
  0x11   :  { %244 = vmatprep.subr.mxu0 %v205_v27  ;;  %321 = vmatprep.subr.mxu1 %v207_v28  ;;  %v513_v36 = vld [vmem:[%s1200_s3 + $0x1f8] sm:$0xff]  ;;  %v480_v39 = vld [vmem:[%s1200_s3 + $0xf0] sm:$0xff]  ;;  %v511_v44 = vld [vmem:[%s1200_s3 + $0x1e8] sm:$0xff] }
  0x12   :  { %245 = vmatpush1.msra.mxu0 %v204_v29  ;;  %322 = vmatpush1.msra.mxu1 %v206_v30  ;;  %v465_v37 = vld [vmem:[%s1200_s3 + $0x78] sm:$0xff]  ;;  %v512_v40 = vld [vmem:[%s1200_s3 + $0x1f0] sm:$0xff]  ;;  %v463_v45 = vld [vmem:[%s1200_s3 + $0x68] sm:$0xff] }
  0x13   :  { %246 = vmatprep.subr.mxu0 %v201_v31  ;;  %323 = vmatprep.subr.mxu1 %v203_v32  ;;  %v497_v38 = vld [vmem:[%s1200_s3 + $0x178] sm:$0xff]  ;;  %v464_v41 = vld [vmem:[%s1200_s3 + $0x70] sm:$0xff]  ;;  %v495_v46 = vld [vmem:[%s1200_s3 + $0x168] sm:$0xff] }
  0x14   :  { %247 = vmatpush1.msra.mxu0 %v200_v33  ;;  %280 = vmatprep.mubr.f32.mxu0 %v832_v17  ;;  %v496_v42 = vld [vmem:[%s1200_s3 + $0x170] sm:$0xff]  ;;  %v478_v47 = vld [vmem:[%s1200_s3 + $0xe0] sm:$0xff]  ;;  %v477_v51 = vld [vmem:[%s1200_s3 + $0xd8] sm:$0xff] }
  0x15   :  { %324 = vmatpush1.msra.mxu1 %v202_v34  ;;  %357 = vmatprep.mubr.f32.mxu1 %v832_v17  ;;  %v510_v48 = vld [vmem:[%s1200_s3 + $0x1e0] sm:$0xff]  ;;  %v509_v52 = vld [vmem:[%s1200_s3 + $0x1d8] sm:$0xff]  ;;  %v476_v55 = vld [vmem:[%s1200_s3 + $0xd0] sm:$0xff] }
  0x16   :  { %686 = vmatmul.mubr.msk.f32.vlgmr.msra.gmra.mxu0 %vm39_vm0, %v21_v16  ;;  %688 = vmatmul.mubr.msk.f32.vlgmr.msra.gmra.mxu1 %vm39_vm0, %v21_v16  ;;  %v462_v49 = vld [vmem:[%s1200_s3 + $0x60] sm:$0xff]  ;;  %v461_v53 = vld [vmem:[%s1200_s3 + $0x58] sm:$0xff]  ;;  %v508_v56 = vld [vmem:[%s1200_s3 + $0x1d0] sm:$0xff] }
  0x17   :  { %286 = vmatprep.mubr.f32.mxu0 %v832_v17  ;;  %363 = vmatprep.mubr.f32.mxu1 %v832_v17  ;;  %v494_v50 = vld [vmem:[%s1200_s3 + $0x160] sm:$0xff]  ;;  %v493_v54 = vld [vmem:[%s1200_s3 + $0x158] sm:$0xff]  ;;  %v460_v57 = vld [vmem:[%s1200_s3 + $0x50] sm:$0xff] }
  0x18   :  { %698 = vmatprep.subr.mxu0 %v481_v35  ;;  %736 = vmatprep.subr.mxu1 %v513_v36  ;;  %v492_v58 = vld [vmem:[%s1200_s3 + $0x150] sm:$0xff]  ;;  %v475_v59 = vld [vmem:[%s1200_s3 + $0xc8] sm:$0xff]  ;;  %v474_v63 = vld [vmem:[%s1200_s3 + $0xc0] sm:$0xff] }
  0x19   :  { %699 = vmatpush3.msra.mxu0 %v465_v37  ;;  %737 = vmatpush3.msra.mxu1 %v497_v38  ;;  %v507_v60 = vld [vmem:[%s1200_s3 + $0x1c8] sm:$0xff]  ;;  %v506_v0 = vld [vmem:[%s1200_s3 + $0x1c0] sm:$0xff]  ;;  %v473_v3 = vld [vmem:[%s1200_s3 + $0xb8] sm:$0xff] }
  0x1a   :  { %687 = vmatmul.mubr.msk.f32.gmra.mxu0 %vm39_vm0, %v22_v22  ;;  %689 = vmatmul.mubr.msk.f32.gmra.mxu1 %vm39_vm0, %v22_v22  ;;  %v459_v61 = vld [vmem:[%s1200_s3 + $0x48] sm:$0xff]  ;;  %v458_v1 = vld [vmem:[%s1200_s3 + $0x40] sm:$0xff]  ;;  %v505_v4 = vld [vmem:[%s1200_s3 + $0x1b8] sm:$0xff] }
  0x1b   :  { %700 = vmatprep.subr.mxu0 %v480_v39  ;;  %738 = vmatprep.subr.mxu1 %v512_v40  ;;  %v491_v62 = vld [vmem:[%s1200_s3 + $0x148] sm:$0xff]  ;;  %v490_v2 = vld [vmem:[%s1200_s3 + $0x140] sm:$0xff]  ;;  %v457_v5 = vld [vmem:[%s1200_s3 + $0x38] sm:$0xff] }
  0x1c   :  { %701 = vmatpush3.msra.mxu0 %v464_v41  ;;  %739 = vmatpush3.msra.mxu1 %v496_v42  ;;  %v489_v6 = vld [vmem:[%s1200_s3 + $0x138] sm:$0xff]  ;;  %v472_v7 = vld [vmem:[%s1200_s3 + $0xb0] sm:$0xff]  ;;  %v471_v11 = vld [vmem:[%s1200_s3 + $0xa8] sm:$0xff] }
  0x1d   :  { %702 = vmatprep.subr.mxu0 %v479_v43  ;;  %740 = vmatprep.subr.mxu1 %v511_v44  ;;  %v504_v8 = vld [vmem:[%s1200_s3 + $0x1b0] sm:$0xff]  ;;  %v503_v12 = vld [vmem:[%s1200_s3 + $0x1a8] sm:$0xff]  ;;  %v470_v15 = vld [vmem:[%s1200_s3 + $0xa0] sm:$0xff] }
  0x1e   :  { %703 = vmatpush3.msra.mxu0 %v463_v45  ;;  %741 = vmatpush3.msra.mxu1 %v495_v46  ;;  %v456_v9 = vld [vmem:[%s1200_s3 + $0x30] sm:$0xff]  ;;  %v455_v13 = vld [vmem:[%s1200_s3 + $0x28] sm:$0xff]  ;;  %v502_v16 = vld [vmem:[%s1200_s3 + $0x1a0] sm:$0xff] }
  0x1f   :  { %704 = vmatprep.subr.mxu0 %v478_v47  ;;  %742 = vmatprep.subr.mxu1 %v510_v48  ;;  %v488_v10 = vld [vmem:[%s1200_s3 + $0x130] sm:$0xff]  ;;  %v487_v14 = vld [vmem:[%s1200_s3 + $0x128] sm:$0xff]  ;;  %v454_v17 = vld [vmem:[%s1200_s3 + $0x20] sm:$0xff] }
  0x20   :  { %705 = vmatpush3.msra.mxu0 %v462_v49  ;;  %743 = vmatpush3.msra.mxu1 %v494_v50  ;;  %v486_v18 = vld [vmem:[%s1200_s3 + $0x120] sm:$0xff]  ;;  %v469_v19 = vld [vmem:[%s1200_s3 + $0x98] sm:$0xff]  ;;  %v468_v23 = vld [vmem:[%s1200_s3 + $0x90] sm:$0xff] }
  0x21   :  { %706 = vmatprep.subr.mxu0 %v477_v51  ;;  %744 = vmatprep.subr.mxu1 %v509_v52  ;;  %v501_v20 = vld [vmem:[%s1200_s3 + $0x198] sm:$0xff]  ;;  %v500_v24 = vld [vmem:[%s1200_s3 + $0x190] sm:$0xff]  ;;  %v467_v27 = vld [vmem:[%s1200_s3 + $0x88] sm:$0xff] }
  0x22   :  { %707 = vmatpush3.msra.mxu0 %v461_v53  ;;  %745 = vmatpush3.msra.mxu1 %v493_v54  ;;  %v453_v21 = vld [vmem:[%s1200_s3 + $0x18] sm:$0xff]  ;;  %v452_v25 = vld [vmem:[%s1200_s3 + $0x10] sm:$0xff]  ;;  %v499_v28 = vld [vmem:[%s1200_s3 + $0x188] sm:$0xff] }
  0x23   :  { %708 = vmatprep.subr.mxu0 %v476_v55  ;;  %746 = vmatprep.subr.mxu1 %v508_v56  ;;  %v485_v22 = vld [vmem:[%s1200_s3 + $0x118] sm:$0xff]  ;;  %v484_v26 = vld [vmem:[%s1200_s3 + $0x110] sm:$0xff]  ;;  %v451_v29 = vld [vmem:[%s1200_s3 + $0x8] sm:$0xff] }
  0x24   :  { %709 = vmatpush3.msra.mxu0 %v460_v57  ;;  %747 = vmatpush3.msra.mxu1 %v492_v58  ;;  %v483_v30 = vld [vmem:[%s1200_s3 + $0x108] sm:$0xff]  ;;  %v466_v31 = vld [vmem:[%s1200_s3 + $0x80] sm:$0xff] }
  0x25   :  { %710 = vmatprep.subr.mxu0 %v475_v59  ;;  %748 = vmatprep.subr.mxu1 %v507_v60  ;;  %v498_v32 = vld [vmem:[%s1200_s3 + $0x180] sm:$0xff] }
  0x26   :  { %711 = vmatpush3.msra.mxu0 %v459_v61  ;;  %749 = vmatpush3.msra.mxu1 %v491_v62  ;;  %v450_v33 = vld [vmem:[%s1200_s3] sm:$0xff] }
  0x27   :  { %712 = vmatprep.subr.mxu0 %v474_v63  ;;  %750 = vmatprep.subr.mxu1 %v506_v0  ;;  %v482_v34 = vld [vmem:[%s1200_s3 + $0x100] sm:$0xff] }
  0x28   :  { %713 = vmatpush3.msra.mxu0 %v458_v1  ;;  %751 = vmatpush3.msra.mxu1 %v490_v2 }
  0x29   :  { %714 = vmatprep.subr.mxu0 %v473_v3  ;;  %752 = vmatprep.subr.mxu1 %v505_v4 }
  0x2a   :  { %715 = vmatpush3.msra.mxu0 %v457_v5  ;;  %753 = vmatpush3.msra.mxu1 %v489_v6 }
  0x2b   :  { %716 = vmatprep.subr.mxu0 %v472_v7  ;;  %754 = vmatprep.subr.mxu1 %v504_v8 }
  0x2c   :  { %717 = vmatpush3.msra.mxu0 %v456_v9  ;;  %755 = vmatpush3.msra.mxu1 %v488_v10 }
  0x2d   :  { %718 = vmatprep.subr.mxu0 %v471_v11  ;;  %756 = vmatprep.subr.mxu1 %v503_v12 }
  0x2e   :  { %719 = vmatpush3.msra.mxu0 %v455_v13  ;;  %757 = vmatpush3.msra.mxu1 %v487_v14 }
  0x2f   :  { %720 = vmatprep.subr.mxu0 %v470_v15  ;;  %758 = vmatprep.subr.mxu1 %v502_v16 }
  0x30   :  { %721 = vmatpush3.msra.mxu0 %v454_v17  ;;  %759 = vmatpush3.msra.mxu1 %v486_v18  ;;  %v435_v17 = vld [vmem:[%s1201_s4 + $0x8] sm:$0xff] }
  0x31   :  { %722 = vmatprep.subr.mxu0 %v469_v19  ;;  %760 = vmatprep.subr.mxu1 %v501_v20 }
  0x32   :  { %723 = vmatpush3.msra.mxu0 %v453_v21  ;;  %761 = vmatpush3.msra.mxu1 %v485_v22  ;;  %v434_v21 = vld [vmem:[%s1201_s4] sm:$0xff] }
  0x33   :  { %724 = vmatprep.subr.mxu0 %v468_v23  ;;  %762 = vmatprep.subr.mxu1 %v500_v24  ;;  %v437_v24 = vld [vmem:[%s1201_s4 + $0x18] sm:$0xff] }
  0x34   :  { %725 = vmatpush3.msra.mxu0 %v452_v25  ;;  %763 = vmatpush3.msra.mxu1 %v484_v26 }
  0x35   :  { %726 = vmatprep.subr.mxu0 %v467_v27  ;;  %764 = vmatprep.subr.mxu1 %v499_v28  ;;  %v436_v28 = vld [vmem:[%s1201_s4 + $0x10] sm:$0xff] }
  0x36   :  { %727 = vmatpush3.msra.mxu0 %v451_v29  ;;  %765 = vmatpush3.msra.mxu1 %v483_v30 }
  0x37   :  { %728 = vmatprep.subr.mxu0 %v466_v31  ;;  %766 = vmatprep.subr.mxu1 %v498_v32 }
  0x38   :  { %729 = vmatpush3.msra.mxu0 %v450_v33  ;;  %767 = vmatpush3.msra.mxu1 %v482_v34 }
  0xca   :  { %v112_v35 = vpop.f32.mrf.mxu0  ;;  %v189_v36 = vpop.f32.mrf.mxu1 }
  0xcb   :  { %v690_v37 = vmul.f32 -1.442695, %v112_v35  ;;  %v692_v38 = vmul.f32 -1.442695, %v189_v36 }
  0xcc   :  { %v114_v39 = vpop.f32.mrf.mxu0  ;;  %v191_v40 = vpop.f32.mrf.mxu1 }
  0xcd   :  { %778 = vpow2.f32 %v690_v37  ;;  %v691_v41 = vmul.f32 -1.442695, %v114_v39  ;;  %v693_v42 = vmul.f32 -1.442695, %v191_v40 }
  0xce   :  { %780 = vpow2.f32 %v692_v38  ;;  %v118_v43 = vpop.f32.mrf.mxu0  ;;  %v195_v44 = vpop.f32.mrf.mxu1  ;;  %v439_v38 = vld [vmem:[%s1201_s4 + $0x28] sm:$0xff] }
  0xcf   :  { %782 = vpow2.f32 %v691_v41  ;;  %v694_v45 = vmul.f32 -1.442695, %v118_v43  ;;  %v696_v46 = vmul.f32 -1.442695, %v195_v44 }
  0xd0   :  { %784 = vpow2.f32 %v693_v42  ;;  %v120_v47 = vpop.f32.mrf.mxu0  ;;  %v197_v48 = vpop.f32.mrf.mxu1 }
  0xd1   :  { %786 = vpow2.f32 %v694_v45  ;;  %v695_v49 = vmul.f32 -1.442695, %v120_v47  ;;  %v697_v50 = vmul.f32 -1.442695, %v197_v48  ;;  %v440_v45 = vld [vmem:[%s1201_s4 + $0x30] sm:$0xff] }
  0xd2   :  { %788 = vpow2.f32 %v696_v46 }
  0xd3   :  { %790 = vpow2.f32 %v695_v49 }
  0xd4   :  { %792 = vpow2.f32 %v697_v50 }
  0xd6   :  { %v282_v3 = vpop.f32.mrf.mxu0  ;;  %v359_v4 = vpop.f32.mrf.mxu1 }
  0xd8   :  { %v284_v6 = vpop.f32.mrf.mxu0  ;;  %v361_v9 = vpop.f32.mrf.mxu1 }
  0xda   :  { %v779_v51 = vpop.eup %778  ;;  %v288_v18 = vpop.f32.mrf.mxu0 }
  0xdb   :  { %v781_v52 = vpop.eup %780  ;;  %v394_v53 = vadd.f32 1.0, %v779_v51  ;;  %v365_v25 = vpop.f32.mrf.mxu1 }
  0xdc   :  { %v783_v54 = vpop.eup %782  ;;  %v396_v55 = vadd.f32 1.0, %v781_v52  ;;  %v290_v37 = vpop.f32.mrf.mxu0 }
  0xdd   :  { %v785_v56 = vpop.eup %784  ;;  %794 = vrcp.f32 %v394_v53  ;;  %v395_v57 = vadd.f32 1.0, %v783_v54 }
  0xde   :  { %v787_v58 = vpop.eup %786  ;;  %796 = vrcp.f32 %v396_v55  ;;  %v397_v59 = vadd.f32 1.0, %v785_v56 }
  0xdf   :  { %v789_v60 = vpop.eup %788  ;;  %798 = vrcp.f32 %v395_v57  ;;  %v398_v61 = vadd.f32 1.0, %v787_v58 }
  0xe0   :  { %v791_v62 = vpop.eup %790  ;;  %800 = vrcp.f32 %v397_v59  ;;  %v400_v63 = vadd.f32 1.0, %v789_v60 }
  0xe1   :  { %v793_v0 = vpop.eup %792  ;;  %802 = vrcp.f32 %v398_v61  ;;  %v399_v1 = vadd.f32 1.0, %v791_v62 }
  0xe2   :  { %804 = vrcp.f32 %v400_v63  ;;  %v401_v2 = vadd.f32 1.0, %v793_v0 }
  0xe3   :  { %806 = vrcp.f32 %v399_v1 }
  0xe4   :  { %808 = vrcp.f32 %v401_v2 }
  0xea   :  { %v795_v5 = vpop.eup %794 }
  0xeb   :  { %v797_v7 = vpop.eup %796  ;;  %v418_v8 = vmul.f32 %v795_v5, %v112_v35 }
  0xec   :  { %v799_v10 = vpop.eup %798  ;;  %v420_v11 = vmul.f32 %v797_v7, %v189_v36 }
  0xed   :  { %v801_v12 = vpop.eup %800  ;;  %v419_v13 = vmul.f32 %v799_v10, %v114_v39  ;;  %v426_v16 = vmul.f32 %v418_v8, %v282_v3 }
  0xee   :  { %v803_v14 = vpop.eup %802  ;;  %v421_v15 = vmul.f32 %v801_v12, %v191_v40  ;;  %v428_v22 = vmul.f32 %v420_v11, %v359_v4  ;;  %v438_v40 = vld [vmem:[%s1201_s4 + $0x20] sm:$0xff] }
  0xef   :  { %v805_v19 = vpop.eup %804  ;;  %v422_v20 = vmul.f32 %v803_v14, %v118_v43  ;;  %v427_v23 = vmul.f32 %v419_v13, %v284_v6  ;;  %v442_v34 = vmul.f32 %v434_v21, %v426_v16  ;;  %v367_v43 = vpop.f32.mrf.mxu1 }
  0xf0   :  { %v807_v26 = vpop.eup %806  ;;  %v424_v27 = vmul.f32 %v805_v19, %v195_v44  ;;  %v429_v29 = vmul.f32 %v421_v15, %v361_v9  ;;  %v444_v39 = vmul.f32 %v436_v28, %v428_v22  ;;  %v441_v44 = vld [vmem:[%s1201_s4 + $0x38] sm:$0xff]  ;;  %s833_s4 = smov [#allocation2]  }
  0xf1   :  { %v809_v30 = vpop.eup %808  ;;  %v423_v31 = vmul.f32 %v807_v26, %v120_v47  ;;  %v443_v32 = vmul.f32 %v435_v17, %v427_v23  ;;  %v430_v36 = vmul.f32 %v422_v20, %v288_v18  ;;  %s671_s10 = sshll.u32 %s833_s4, 4  ;;  %s672_s10 = int_to_ptr.vmem [resolvable:$true] %s671_s10 }
  0xf2   :  { %v425_v33 = vmul.f32 %v809_v30, %v197_v48  ;;  %v445_v35 = vmul.f32 %v437_v24, %v429_v29  ;;  %v432_v41 = vmul.f32 %v424_v27, %v365_v25  ;;  %s810_s11 = scalar_lea.vmem %s672_s10, 256  ;;  %p815_p1 = scmp.lt.s32.totalorder %s672_s10, %s672_s10 }
  0xf3   :  { %v431_v42 = vmul.f32 %v423_v31, %v290_v37  ;;  %578 = vmatprep.mubr.f32.mxu0 %v443_v32  ;;  %v446_v48 = vmul.f32 %v438_v40, %v430_v36  ;;  %p811_p0 = scmp.ne.s32.totalorder %s672_s10, %s810_s11  ;;  %p816_p2 = scmp.lt.s32.totalorder %s810_s11, %s810_s11 }
  0xf4   :  { %v433_v46 = vmul.f32 %v425_v33, %v367_v43  ;;  %653 = vmatprep.mubr.f32.mxu1 %v445_v35  ;;  %579 = vmatmul.mubr.f32.vlgmr.msra.gmra.mxu0 %v442_v34  ;;  %v448_v50 = vmul.f32 %v440_v45, %v432_v41 }
  0xf5   :  { %v447_v47 = vmul.f32 %v439_v38, %v431_v42  ;;  %654 = vmatmul.mubr.f32.vlgmr.msra.gmra.mxu1 %v444_v39  ;;  %p817_p3 = por %p816_p2, %p815_p1 }
  0xf6   :  { %v449_v49 = vmul.f32 %v441_v44, %v433_v46 }
  0xf7   :  { %583 = vmatprep.mubr.f32.mxu0 %v447_v47  ;;  %p818_p4 = pnand %p817_p3, %p811_p0 }
  0xf8   :  { %658 = vmatprep.mubr.f32.mxu1 %v449_v49  ;;  %584 = vmatmul.mubr.f32.gmra.mxu0 %v446_v48 }
  0xf9   :  { %659 = vmatmul.mubr.f32.gmra.mxu1 %v448_v50 }
 0x1b4   :  { %v730_v51 = vpop.f32.mrf.mxu0 }
 0x1b5   :  { %v768_v52 = vpop.f32.mrf.mxu1 }
 0x1b6   :  { %v731_v53 = vpop.f32.mrf.mxu0 }
 0x1b7   :  { %v732_v54 = vadd.f32 %v731_v53, %v730_v51  ;;  %v769_v55 = vpop.f32.mrf.mxu1 }
 0x1b8   :  { %v770_v56 = vadd.f32 %v769_v55, %v768_v52  ;;  %v733_v57 = vpop.f32.mrf.mxu0 }
 0x1b9   :  { %v771_v58 = vpop.f32.mrf.mxu1 }
 0x1ba   :  { %v656_v59 = vadd.f32 %v770_v56, %v732_v54  ;;  %v734_v60 = vpop.f32.mrf.mxu0 }
 0x1bb   :  { %v735_v61 = vadd.f32 %v734_v60, %v733_v57  ;;  %v772_v62 = vpop.f32.mrf.mxu1 }
 0x1bc   :  { %664 = vst.msk [vmem:[#allocation2] sm:$0xff] %vm39_vm0, %v656_v59  ;;  %v773_v63 = vadd.f32 %v772_v62, %v771_v58 }
 0x1be   :  { %v661_v0 = vadd.f32 %v773_v63, %v735_v61 }
 0x1c0   :  { %665 = vst.msk [vmem:[#allocation2 + $0x8] sm:$0xff] %vm39_vm0, %v661_v0 }
 0x1c1   :  { %821 = shalt.err (!%p818_p4)
}
 0x1c2   :  { %s834_s12 = smov 128   ;;  %s835_s13 = smov 8  }
 0x1c3   :  { %677 = dma.vmem_to_hbm [thread:$0]  %s672_s10, 256, %s1202_s5, [#allocation3], %s834_s12, %s834_s12, %s835_s13  }
 0x1c4   :  { %830 = dma.done.wait [#allocation3], 256  }
 0x1c5   :  { %831 = vsyncadd [#allocation3], 4294967040 }
 0x1c6   :  { %681 = vsyncpa [#allocation3], 1 }

</bundles_post_ra>
